<compile_context>
chip_gen: v7x
topology: tpu7x:2x2x1
jax: 0.10.0
libtpu: 0.0.40
codegen_flags: <defaults>
</compile_context>

<pallas_src>
import functools

import jax
import jax.numpy as jnp
from jax.experimental import pallas as pl
from jax.experimental.pallas import tpu as pltpu


_MAX_BLOCK_HBM_BYTES = 16 * 1024 * 1024   # native logits bytes per grid step (target)
_VMEM_LIMIT_CAP = 96 * 1024 * 1024        # never request more scoped VMEM than this


def _vmem_limit_bytes():
    """Per-generation scoped-VMEM limit: ~3/4 of physical VMEM, capped at 96 MiB."""
    cap = 64 * 1024 * 1024                 # conservative default (v7x per-TC physical)
    try:
        cap = int(getattr(pltpu.get_tpu_info(), "vmem_capacity_bytes", cap))
    except Exception:
        pass
    return min((cap * 3) // 4, _VMEM_LIMIT_CAP)


def _choose_tiles(n, c, dtype, vmem_limit, max_block_elems=None):
    """Pick (tile_rows, tile_cols) for the (N, C) logits array.

    VMEM budget per step ~= 2 * native block (double buffering) + ~2 * f32
    intermediates (the single f32 cast + exp result), kept under ~60% of the
    scoped limit, and the native HBM bytes per step capped at ~16 MiB.
    """
    itemsize = jnp.dtype(dtype).itemsize
    mult = max(8, 32 // itemsize)                      # 8 f32, 16 bf16, 32 int8/fp8
    per_elem = 2 * itemsize + 8
    budget = int(0.6 * vmem_limit) // per_elem
    budget = min(budget, _MAX_BLOCK_HBM_BYTES // itemsize)
    if max_block_elems is not None:                    # test hook to force tiling
        budget = min(budget, int(max_block_elems))
    budget = max(budget, mult * 128)                   # floor: one packed block

    if c <= budget // mult:
        # Whole class axis fits in one block: split rows only.
        tc = c
        tn = budget // c
        if tn >= n:
            tn = n                                     # full dim (any size allowed)
        else:
            tn = max(mult, (tn // mult) * mult)
    else:
        # Large C: minimal packed row tile, split the class axis (online LSE).
        tn = mult if n >= mult else n
        tc = max(128, ((budget // max(tn, 1)) // 128) * 128)
        tc = min(tc, -(-c // 128) * 128)

    # Megacore balance (v7x has 2 TensorCores): prefer >= 2 row tiles when a
    # single tile would hold a substantial amount of work.
    if (tn == n and -(-c // tc) == 1 and n >= 2 * mult
            and n * c * itemsize >= (2 << 20)):
        half = -(-n // 2)
        tn = min(n, -(-half // mult) * mult)
    return tn, tc


def _nll_online_kernel(logits_ref, tgt_ref, out_ref, m_sc, l_sc, g_sc, *,
                       n_total, c_total, tile_rows, tile_cols,
                       mask_rows, mask_cols):
    """Per-row-tile partial sum of target log-probs with an online LSE over C."""
    i = pl.program_id(0)           # row-tile index ("parallel")
    j = pl.program_id(1)           # class-tile index ("arbitrary", innermost)
    n_col = pl.num_programs(1)

    @pl.when(j == 0)
    def _init():
        m_sc[...] = jnp.full_like(m_sc, -jnp.inf)
        l_sc[...] = jnp.zeros_like(l_sc)
        g_sc[...] = jnp.zeros_like(g_sc)

    x = logits_ref[...]                                   # native dtype (TN, TC)
    tn, tc = x.shape
    tgt = tgt_ref[...]                                    # (TN, 1) int32

    col = jax.lax.broadcasted_iota(jnp.int32, (tn, tc), 1) + j * tile_cols
    if mask_cols:                                         # trace-time switch
        x = jnp.where(col < c_total, x, jnp.asarray(-jnp.inf, x.dtype))

    # Row max and target gather on the native tile (packed bf16 VPU on v6e/v7x);
    # the tile is cast to f32 exactly once (for the exp pass below).
    blk_max = jnp.max(x, axis=1, keepdims=True).astype(jnp.float32)          # (TN,1)
    g_blk = jnp.sum(jnp.where(col == tgt, x, jnp.zeros_like(x)),
                    axis=1, keepdims=True).astype(jnp.float32)               # (TN,1)

    m_prev = m_sc[...]
    m_new = jnp.maximum(m_prev, blk_max)
    p = jnp.exp(x.astype(jnp.float32) - m_new)            # padded cols -> exp(-inf)=0
    l_sc[...] = l_sc[...] * jnp.exp(m_prev - m_new) + jnp.sum(p, axis=1, keepdims=True)
    m_sc[...] = m_new
    g_sc[...] = g_sc[...] + g_blk

    @pl.when(j == n_col - 1)
    def _finalize():
        # logp[target] = logits[target] - (max + log(sum exp(logits - max)))
        logp_t = g_sc[...] - (m_sc[...] + jnp.log(l_sc[...]))                # (TN,1)
        if mask_rows:                                     # trace-time switch
            row = jax.lax.broadcasted_iota(jnp.int32, (tn, 1), 0) + i * tile_rows
            # select drops any NaN/Inf produced by garbage-padded rows.
            logp_t = jnp.where(row < n_total, logp_t, 0.0)
        part = jnp.sum(logp_t)
        # Lane-dense, unmasked (8,128) store: partial sum in [0,0], zeros elsewhere.
        r8 = jax.lax.broadcasted_iota(jnp.int32, (8, 128), 0)
        c128 = jax.lax.broadcasted_iota(jnp.int32, (8, 128), 1)
        out_ref[...] = jnp.where((r8 == 0) & (c128 == 0), part, 0.0)


def elbo_loss(logits, aux_targets, kl_divergence, kl_weight=1.0, *,
              _max_block_elems=None):
    """ELBO forward: nll_loss(log_softmax(logits, 1), targets) + kl_weight * kl."""
    n, c = logits.shape
    vmem_limit = _vmem_limit_bytes()
    tn, tc = _choose_tiles(n, c, logits.dtype, vmem_limit, _max_block_elems)
    num_row = -(-n // tn)
    num_col = -(-c // tc)
    mask_rows = (n % tn) != 0
    mask_cols = (c % tc) != 0

    tgt2d = aux_targets.astype(jnp.int32).reshape(n, 1)
    # TODO(synk): PyTorch nll_loss's ignore_index semantics are not implemented;
    # targets are assumed to be in [0, C).

    kernel = functools.partial(
        _nll_online_kernel,
        n_total=n, c_total=c, tile_rows=tn, tile_cols=tc,
        mask_rows=mask_rows, mask_cols=mask_cols)

    itemsize = jnp.dtype(logits.dtype).itemsize
    partials = pl.pallas_call(
        kernel,
        out_shape=jax.ShapeDtypeStruct((num_row * 8, 128), jnp.float32),
        grid=(num_row, num_col),
        in_specs=[
            pl.BlockSpec((tn, tc), lambda i, j: (i, j)),
            pl.BlockSpec((tn, 1), lambda i, j: (i, 0)),
        ],
        out_specs=pl.BlockSpec((8, 128), lambda i, j: (i, 0)),
        scratch_shapes=[
            pltpu.VMEM((tn, 1), jnp.float32),   # running max m
            pltpu.VMEM((tn, 1), jnp.float32),   # running sum-exp l
            pltpu.VMEM((tn, 1), jnp.float32),   # gathered target logit
        ],
        compiler_params=pltpu.CompilerParams(
            dimension_semantics=("parallel", "arbitrary"),
            vmem_limit_bytes=vmem_limit,
        ),
        cost_estimate=pl.CostEstimate(
            flops=6 * n * c,
            transcendentals=n * c,
            bytes_accessed=(n * c * itemsize + n * 4 * num_col
                            + num_row * 8 * 128 * 4),
        ),
    )(logits, tgt2d)

    # Tiny scalar epilogue in the wrapper: global mean + KL term
    # (keeps kl_weight out of the kernel -> no per-weight recompiles).
    nll = -jnp.sum(partials) / jnp.float32(n)
    return nll + jnp.float32(kl_weight) * jnp.asarray(kl_divergence, jnp.float32)


def _reference(logits, targets, kl, kl_weight=1.0):
    logp = jax.nn.log_softmax(logits.astype(jnp.float32), axis=1)
    nll = -jnp.mean(logp[jnp.arange(logits.shape[0]), targets])
    return nll + kl_weight * jnp.asarray(kl, jnp.float32)


if __name__ == "__main__":
    key = jax.random.PRNGKey(0)
    k1, k2, k3, k4, k5, k6, k7 = jax.random.split(key, 7)

    # Case 1: small batch, single tile, f32.
    N, C = 8, 32
    logits = jax.random.normal(k1, (N, C), dtype=jnp.float32)
    aux_targets = jax.random.randint(k2, (N,), 0, C, dtype=jnp.int32)
    kl_divergence = jnp.abs(jax.random.normal(k3, (), dtype=jnp.float32))

    out = jax.block_until_ready(elbo_loss(logits, aux_targets, kl_divergence, 1.0))
    ref = _reference(logits, aux_targets, kl_divergence, 1.0)
    assert jnp.allclose(out, ref, atol=1e-5, rtol=1e-5), (out, ref)

    # Case 2: batch not a multiple of 8 (full-dim row block), odd C.
    N2, C2 = 12, 40
    logits2 = jax.random.normal(k4, (N2, C2), dtype=jnp.float32)
    aux_targets2 = jax.random.randint(k5, (N2,), 0, C2, dtype=jnp.int32)
    out2 = jax.block_until_ready(elbo_loss(logits2, aux_targets2, kl_divergence, 0.5))
    ref2 = _reference(logits2, aux_targets2, kl_divergence, 0.5)
    assert jnp.allclose(out2, ref2, atol=1e-5, rtol=1e-5), (out2, ref2)

    # Case 3: bf16 inputs with a tiny forced block budget -> exercises the
    # online-LSE class split, padded-column masking and padded-row masking.
    N3, C3 = 20, 300
    logits3 = jax.random.normal(k6, (N3, C3), dtype=jnp.float32).astype(jnp.bfloat16)
    aux_targets3 = jax.random.randint(k7, (N3,), 0, C3, dtype=jnp.int32)
    out3 = jax.block_until_ready(
        elbo_loss(logits3, aux_targets3, kl_divergence, 0.25, _max_block_elems=2048))
    ref3 = _reference(logits3, aux_targets3, kl_divergence, 0.25)
    assert jnp.allclose(out3, ref3, atol=1e-4, rtol=1e-4), (out3, ref3)

    print("KERNEL_OK")
</pallas_src>

<mosaic_0001>
module attributes {stable_mosaic.version = 11 : i64} {
  func.func @_nll_online_kernel(%arg0: i32, %arg1: i32, %arg2: memref<8x32xf32, #tpu.memory_space<vmem>>, %arg3: memref<8x1xi32, #tpu.memory_space<vmem>>, %arg4: memref<8x128xf32, #tpu.memory_space<vmem>>, %arg5: memref<8x1xf32, #tpu.memory_space<vmem>>, %arg6: memref<8x1xf32, #tpu.memory_space<vmem>>, %arg7: memref<8x1xf32, #tpu.memory_space<vmem>>) attributes {dimension_semantics = [#tpu.dimension_semantics<parallel>, #tpu.dimension_semantics<arbitrary>], iteration_bounds = array<i64: 1, 1>, scalar_prefetch = 0 : i64, scratch_operands = 3 : i64, tpu.core_type = #tpu.core_type<tc>, window_params = [{transform_indices = @transform_0, window_bounds = array<i64: 8, 32>}, {transform_indices = @transform_1, window_bounds = array<i64: 8, 1>}, {transform_indices = @transform_2, window_bounds = array<i64: 8, 128>}]} {
    %c0_i32 = arith.constant 0 : i32
    %0 = arith.cmpi eq, %arg1, %c0_i32 : i32
    %1 = arith.extui %0 : i1 to i32
    %c0_i32_0 = arith.constant 0 : i32
    %2 = arith.cmpi ne, %1, %c0_i32_0 : i32
    scf.if %2 {
      %cst_21 = arith.constant 0xFF800000 : f32
      %37 = vector.broadcast %cst_21 : f32 to vector<8x1xf32>
      %c0_22 = arith.constant 0 : index
      %c0_23 = arith.constant 0 : index
      %38 = vector.load %arg5[%c0_22, %c0_23] : memref<8x1xf32, #tpu.memory_space<vmem>>, vector<8x1xf32>
      tpu.vector_store %arg5[%c0_22, %c0_23], %37 {strides = array<i32>} : memref<8x1xf32, #tpu.memory_space<vmem>>, vector<8x1xf32>,
      %cst_24 = arith.constant 0.000000e+00 : f32
      %39 = vector.broadcast %cst_24 : f32 to vector<8x1xf32>
      %c0_25 = arith.constant 0 : index
      %c0_26 = arith.constant 0 : index
      %40 = vector.load %arg6[%c0_25, %c0_26] : memref<8x1xf32, #tpu.memory_space<vmem>>, vector<8x1xf32>
      tpu.vector_store %arg6[%c0_25, %c0_26], %39 {strides = array<i32>} : memref<8x1xf32, #tpu.memory_space<vmem>>, vector<8x1xf32>,
      %cst_27 = arith.constant 0.000000e+00 : f32
      %41 = vector.broadcast %cst_27 : f32 to vector<8x1xf32>
      %c0_28 = arith.constant 0 : index
      %c0_29 = arith.constant 0 : index
      %42 = vector.load %arg7[%c0_28, %c0_29] : memref<8x1xf32, #tpu.memory_space<vmem>>, vector<8x1xf32>
      tpu.vector_store %arg7[%c0_28, %c0_29], %41 {strides = array<i32>} : memref<8x1xf32, #tpu.memory_space<vmem>>, vector<8x1xf32>,
    } else {
    }
    %c0 = arith.constant 0 : index
    %c0_1 = arith.constant 0 : index
    %3 = vector.load %arg2[%c0, %c0_1] : memref<8x32xf32, #tpu.memory_space<vmem>>, vector<8x32xf32>
    %c0_2 = arith.constant 0 : index
    %c0_3 = arith.constant 0 : index
    %4 = vector.load %arg3[%c0_2, %c0_3] : memref<8x1xi32, #tpu.memory_space<vmem>>, vector<8x1xi32>
    %5 = tpu.iota {dimensions = array<i32: 1>} : vector<8x32xi32>
    %c32_i32 = arith.constant 32 : i32
    %6 = arith.muli %arg1, %c32_i32 : i32
    %7 = vector.broadcast %6 : i32 to vector<8x32xi32>
    %8 = arith.addi %5, %7 : vector<8x32xi32>
    %cst = arith.constant dense<0xFF800000> : vector<8xf32>
    %9 = vector.multi_reduction <maximumf>, %3, %cst [1] : vector<8x32xf32> to vector<8xf32>
    %10 = vector.shape_cast %9 : vector<8xf32> to vector<8x1xf32>
    %11 = vector.broadcast %4 : vector<8x1xi32> to vector<8x32xi32>
    %12 = arith.cmpi eq, %8, %11 : vector<8x32xi32>
    %cst_4 = arith.constant 0.000000e+00 : f32
    %13 = vector.broadcast %cst_4 : f32 to vector<8x32xf32>
    %14 = arith.select %12, %3, %13 : vector<8x32xi1>, vector<8x32xf32>
    %cst_5 = arith.constant dense<0.000000e+00> : vector<8xf32>
    %15 = vector.multi_reduction <add>, %14, %cst_5 [1] : vector<8x32xf32> to vector<8xf32>
    %16 = vector.shape_cast %15 : vector<8xf32> to vector<8x1xf32>
    %c0_6 = arith.constant 0 : index
    %c0_7 = arith.constant 0 : index
    %17 = vector.load %arg5[%c0_6, %c0_7] : memref<8x1xf32, #tpu.memory_space<vmem>>, vector<8x1xf32>
    %18 = arith.maximumf %17, %10 : vector<8x1xf32>
    %19 = vector.broadcast %18 : vector<8x1xf32> to vector<8x32xf32>
    %20 = arith.subf %3, %19 : vector<8x32xf32>
    %21 = math.exp %20 : vector<8x32xf32>
    %c0_8 = arith.constant 0 : index
    %c0_9 = arith.constant 0 : index
    %22 = vector.load %arg6[%c0_8, %c0_9] : memref<8x1xf32, #tpu.memory_space<vmem>>, vector<8x1xf32>
    %23 = arith.subf %17, %18 : vector<8x1xf32>
    %24 = math.exp %23 : vector<8x1xf32>
    %25 = arith.mulf %22, %24 : vector<8x1xf32>
    %cst_10 = arith.constant dense<0.000000e+00> : vector<8xf32>
    %26 = vector.multi_reduction <add>, %21, %cst_10 [1] : vector<8x32xf32> to vector<8xf32>
    %27 = vector.shape_cast %26 : vector<8xf32> to vector<8x1xf32>
    %28 = arith.addf %25, %27 : vector<8x1xf32>
    %c0_11 = arith.constant 0 : index
    %c0_12 = arith.constant 0 : index
    %29 = vector.load %arg6[%c0_11, %c0_12] : memref<8x1xf32, #tpu.memory_space<vmem>>, vector<8x1xf32>
    tpu.vector_store %arg6[%c0_11, %c0_12], %28 {strides = array<i32>} : memref<8x1xf32, #tpu.memory_space<vmem>>, vector<8x1xf32>,
    %c0_13 = arith.constant 0 : index
    %c0_14 = arith.constant 0 : index
    %30 = vector.load %arg5[%c0_13, %c0_14] : memref<8x1xf32, #tpu.memory_space<vmem>>, vector<8x1xf32>
    tpu.vector_store %arg5[%c0_13, %c0_14], %18 {strides = array<i32>} : memref<8x1xf32, #tpu.memory_space<vmem>>, vector<8x1xf32>,
    %c0_15 = arith.constant 0 : index
    %c0_16 = arith.constant 0 : index
    %31 = vector.load %arg7[%c0_15, %c0_16] : memref<8x1xf32, #tpu.memory_space<vmem>>, vector<8x1xf32>
    %32 = arith.addf %31, %16 : vector<8x1xf32>
    %c0_17 = arith.constant 0 : index
    %c0_18 = arith.constant 0 : index
    %33 = vector.load %arg7[%c0_17, %c0_18] : memref<8x1xf32, #tpu.memory_space<vmem>>, vector<8x1xf32>
    tpu.vector_store %arg7[%c0_17, %c0_18], %32 {strides = array<i32>} : memref<8x1xf32, #tpu.memory_space<vmem>>, vector<8x1xf32>,
    %c0_i32_19 = arith.constant 0 : i32
    %34 = arith.cmpi eq, %arg1, %c0_i32_19 : i32
    %35 = arith.extui %34 : i1 to i32
    %c0_i32_20 = arith.constant 0 : i32
    %36 = arith.cmpi ne, %35, %c0_i32_20 : i32
    scf.if %36 {
      %c0_21 = arith.constant 0 : index
      %c0_22 = arith.constant 0 : index
      %37 = vector.load %arg7[%c0_21, %c0_22] : memref<8x1xf32, #tpu.memory_space<vmem>>, vector<8x1xf32>
      %c0_23 = arith.constant 0 : index
      %c0_24 = arith.constant 0 : index
      %38 = vector.load %arg5[%c0_23, %c0_24] : memref<8x1xf32, #tpu.memory_space<vmem>>, vector<8x1xf32>
      %c0_25 = arith.constant 0 : index
      %c0_26 = arith.constant 0 : index
      %39 = vector.load %arg6[%c0_25, %c0_26] : memref<8x1xf32, #tpu.memory_space<vmem>>, vector<8x1xf32>
      %40 = math.log %39 : vector<8x1xf32>
      %41 = arith.addf %38, %40 : vector<8x1xf32>
      %42 = arith.subf %37, %41 : vector<8x1xf32>
      %43 = vector.shape_cast %42 : vector<8x1xf32> to vector<1x8x1xf32>
      %cst_27 = arith.constant dense<0.000000e+00> : vector<1xf32>
      %44 = vector.multi_reduction <add>, %43, %cst_27 [1, 2] : vector<1x8x1xf32> to vector<1xf32>
      %45 = vector.shape_cast %44 : vector<1xf32> to vector<1x1x1xf32>
      %46 = vector.extract %45[0, 0, 0] : f32 from vector<1x1x1xf32>
      %47 = tpu.iota {dimensions = array<i32: 0>} : vector<8x128xi32>
      %48 = tpu.iota {dimensions = array<i32: 1>} : vector<8x128xi32>
      %c0_i32_28 = arith.constant 0 : i32
      %49 = vector.broadcast %c0_i32_28 : i32 to vector<8x128xi32>
      %50 = arith.cmpi eq, %47, %49 : vector<8x128xi32>
      %c0_i32_29 = arith.constant 0 : i32
      %51 = vector.broadcast %c0_i32_29 : i32 to vector<8x128xi32>
      %52 = arith.cmpi eq, %48, %51 : vector<8x128xi32>
      %53 = arith.andi %50, %52 : vector<8x128xi1>
      %cst_30 = arith.constant 0.000000e+00 : f32
      %54 = vector.broadcast %46 : f32 to vector<8x128xf32>
      %55 = vector.broadcast %cst_30 : f32 to vector<8x128xf32>
      %56 = arith.select %53, %54, %55 : vector<8x128xi1>, vector<8x128xf32>
      %c0_31 = arith.constant 0 : index
      %c0_32 = arith.constant 0 : index
      %57 = vector.load %arg4[%c0_31, %c0_32] : memref<8x128xf32, #tpu.memory_space<vmem>>, vector<8x128xf32>
      tpu.vector_store %arg4[%c0_31, %c0_32], %56 {strides = array<i32>} : memref<8x128xf32, #tpu.memory_space<vmem>>, vector<8x128xf32>,
    } else {
    }
    return
  }
  func.func @transform_0(%arg0: i32, %arg1: i32) -> (i32, i32) {
    %c0_i32 = arith.constant 0 : i32
    return %arg0, %arg1 : i32, i32
  }
  func.func @transform_1(%arg0: i32, %arg1: i32) -> (i32, i32) {
    %c0_i32 = arith.constant 0 : i32
    %c0_i32_0 = arith.constant 0 : i32
    return %arg0, %c0_i32 : i32, i32
  }
  func.func @transform_2(%arg0: i32, %arg1: i32) -> (i32, i32) {
    %c0_i32 = arith.constant 0 : i32
    %c0_i32_0 = arith.constant 0 : i32
    return %arg0, %c0_i32 : i32, i32
  }
}

</mosaic_0001>

<bundles_post_ra>
// kernel: tpu_custom_call.1
= control target key start
LH: loop header
LB: loop body
LE: loop exit
PB: predicated region body
PF: predicated region fallthrough
CT: control target
= control target key end

     0   :  { %vm27_vm0 = vcmask 261120   ;;  %s191_s0 = inlined_call_operand.vmem [shape: f32[8,32], index: 0, kind: input, shape index: {}]   ;;  %s192_s1 = inlined_call_operand.vmem [shape: s32[8,1], index: 1, kind: input, shape index: {}]   ;;  %s193_s2 = inlined_call_operand.hbm [shape: f32[8,128], index: 2, kind: output, shape index: {}]  }
   0x1   :  { %v20_v0 = vld [vmem:[%s191_s0] sm:$0xff] }
   0x2   :  { %7 = vsyncpa [#allocation6], 0  ;;  %v28_v1 = vsel %vm27_vm0, %v20_v0, -inf  ;;  %vm16_vm1 = vcmask 7168   ;;  %v144_v2 = vmov -inf   ;;  %v145_v3 = vmov 0  }
   0x3   :  { %29 = vmax.xlane.f32.xlu0 %v28_v1  ;;  %17 = vst.msk [vmem:[#allocation2] sm:$0xff] %vm16_vm1, %v144_v2  ;;  %113 = vset.pattern.permute.xlu1 %v145_v3  ;;  %v21_v4 = vld [vmem:[%s192_s1] sm:$0xff]  ;;  %v146_v5 = vmov 0.0   ;;  %v22_v13 = vlaneseq  ;;  %s147_s0 = smov [#allocation5]  }
   0x4   :  { %112 = vset.pattern.permute.xlu0 %v145_v3  ;;  %32 = vperm.xlu1 %113, %v21_v4   ;;  %18 = vst.msk [vmem:[#allocation3] sm:$0xff] %vm16_vm1, %v146_v5  ;;  %19 = vst.msk [vmem:[#allocation4] sm:$0xff] %vm16_vm1, %v146_v5  ;;  %s98_s1 = sshll.u32 %s147_s0, 4  ;;  %s99_s1 = int_to_ptr.vmem [resolvable:$true] %s98_s1 }
   0x5   :  { %v23_v14 = vand.u32 127, %v22_v13  ;;  %v85_v44 = vshrl.u32 %v22_v13, 7  ;;  %s120_s14 = scalar_lea.vmem %s99_s1, 128  ;;  %p125_p1 = scmp.lt.s32.totalorder %s99_s1, %s99_s1 }
   0x6   :  { %p121_p0 = scmp.ne.s32.totalorder %s99_s1, %s120_s14  ;;  %p126_p2 = scmp.lt.s32.totalorder %s120_s14, %s120_s14 }
   0x7   :  { %vm86_vm3 = vcmp.eq.s32.totalorder %v85_v44, 0  ;;  %vm87_vm4 = vcmp.eq.s32.totalorder %v23_v14, 0 }
   0x8   :  { %vm88_vm5 = vmand %vm86_vm3, %vm87_vm4  ;;  %p127_p3 = por %p126_p2, %p125_p1 }
   0xa   :  { %v39_v6 = vld [vmem:[#allocation2] sm:$0xff]  ;;  %p128_p4 = pnand %p127_p3, %p121_p0 }
   0xb   :  { %v49_v22 = vld [vmem:[#allocation3] sm:$0xff]  ;;  %v61_v26 = vld [vmem:[#allocation4] sm:$0xff] }
  0x83   :  { %v33_v15 = vpop.permute.xlu1 %32 }
  0x84   :  { %vm34_vm2 = vcmp.eq.s32.totalorder %v23_v14, %v33_v15 }
  0x85   :  { %v35_v17 = vsel %vm34_vm2, %v20_v0, 0.0 }
  0x86   :  { %v36_v19 = vsel %vm27_vm0, %v35_v17, 0.0 }
  0x90   :  { %v30_v7 = vpop.xlane.xlu0 %29 }
  0x91   :  { %v40_v8 = vmax.f32 %v39_v6, %v30_v7 }
  0x93   :  { %v50_v9 = vsub.f32 %v39_v6, %v40_v8  ;;  %60 = vst.msk [vmem:[#allocation2] sm:$0xff] %vm16_vm1, %v40_v8  ;;  %43 = vperm.xlu0 %112, %v40_v8  }
  0x95   :  { %v51_v20 = vmul.f32 1.442695, %v50_v9 }
  0x9a   :  { %v68_v33 = vld [vmem:[#allocation2] sm:$0xff] }
 0x112   :  { %v44_v10 = vpop.permute.xlu0 %43 }
 0x113   :  { %v46_v11 = vsub.f32 %v20_v0, %v44_v10 }
 0x115   :  { %v47_v12 = vmul.f32 1.442695, %v46_v11 }
 0x117   :  { %114 = vpow2.f32 %v47_v12 }
 0x118   :  { %116 = vpow2.f32 %v51_v20 }
 0x121   :  { %v115_v16 = vpop.eup %114 }
 0x122   :  { %v54_v18 = vsel %vm27_vm0, %v115_v16, 0.0  ;;  %v117_v21 = vpop.eup %116 }
 0x123   :  { %55 = vadd.xlane.f32.xlu1 %v54_v18  ;;  %v53_v23 = vmul.f32 %v117_v21, %v49_v22 }
 0x127   :  { %37 = vadd.xlane.f32.xlu1 %v36_v19 }
 0x1b0   :  { %v56_v24 = vpop.xlane.xlu1 %55 }
 0x1b1   :  { %v57_v25 = vadd.f32 %v56_v24, %v53_v23 }
 0x1b3   :  { %59 = vst.msk [vmem:[#allocation3] sm:$0xff] %vm16_vm1, %v57_v25 }
 0x1b4   :  { %v38_v27 = vpop.xlane.xlu1 %37 }
 0x1b5   :  { %v62_v28 = vadd.f32 %v61_v26, %v38_v27 }
 0x1b7   :  { %63 = vst.msk [vmem:[#allocation4] sm:$0xff] %vm16_vm1, %v62_v28 }
 0x1ba   :  { %v69_v29 = vld [vmem:[#allocation3] sm:$0xff] }
 0x1bb   :  { %118 = vlog2.f32 %v69_v29 }
 0x1be   :  { %v67_v32 = vld [vmem:[#allocation4] sm:$0xff] }
 0x1c5   :  { %v119_v30 = vpop.eup %118 }
 0x1c6   :  { %v71_v31 = vmul.f32 0.6931472, %v119_v30 }
 0x1c8   :  { %v72_v34 = vadd.f32 %v71_v31, %v68_v33 }
 0x1ca   :  { %v73_v35 = vsub.f32 %v67_v32, %v72_v34 }
 0x1cc   :  { %v74_v36 = vsel %vm16_vm1, %v73_v35, 0.0 }
 0x1cd   :  { %75 = vadd.xlane.f32.xlu1 %v74_v36 }
 0x25a   :  { %v76_v37 = vpop.xlane.xlu1 %75 }
 0x25b   :  { %v77_v38 = vrot.slane %v76_v37, 4 }
 0x25d   :  { %v78_v39 = vadd.f32 %v77_v38, %v76_v37 }
 0x25f   :  { %v79_v40 = vrot.slane %v78_v39, 2 }
 0x261   :  { %v80_v41 = vadd.f32 %v79_v40, %v78_v39 }
 0x263   :  { %v81_v42 = vrot.slane %v80_v41, 1 }
 0x265   :  { %v82_v43 = vadd.f32 %v81_v42, %v80_v41 }
 0x267   :  { %106 = vpush %v82_v43 }
 0x298   :  { %s107_s13 = spop %106 }
 0x299   :  { %v89_v45 = vstv %s107_s13 }
 0x29a   :  { %v90_v46 = vsel %vm88_vm5, %v89_v45, 0.0 }
 0x29b   :  { %91 = vst [vmem:[#allocation5] sm:$0xff] %v90_v46 }
 0x29c   :  { %131 = shalt.err (!%p128_p4)
}
 0x29d   :  { %s132_s17 = scalar_lea.hbm %s193_s2, 128 }
 0x29e   :  { %p133_p5 = scmp.ne.s32.totalorder %s193_s2, %s132_s17  ;;  %p136_p6 = scmp.lt.u32.totalorder %s132_s17, %s193_s2 }
 0x2a0   :  { %p138_p7 = pnand %p136_p6, %p133_p5 }
 0x2a2   :  { %141 = shalt.err (!%p138_p7)
}
 0x2a3   :  { %101 = dma.vmem_to_hbm [thread:$0]  %s99_s1, 128, %s193_s2, [#allocation6]  }
 0x2a4   :  { %142 = dma.done.wait [#allocation6], 128  }
 0x2a5   :  { %143 = vsyncadd [#allocation6], 4294967168 }
 0x2a6   :  { %105 = vsyncpa [#allocation6], 1 }

</bundles_post_ra>
